<compile_context>
chip_gen: v5e
topology: v5e:2x2
jax: 0.10.0
libtpu: 0.0.40
codegen_flags: <defaults>
</compile_context>

<pallas_src>
import numpy as np
import jax
import jax.numpy as jnp
from jax import lax
from jax.experimental import pallas as pl
from jax.experimental.pallas import tpu as pltpu

LANE = 128
SUBLANE_BF16 = 16            # bf16 sublane packing -> batch tiles multiple of 16
MAX_BATCH_TILE = 1024        # upper bound on rows per grid step
SUB_TILE = 256               # rows per in-kernel chunk (MXU/VPU overlap unit)
VMEM_CAP_BYTES = 48 << 20    # stay well inside v7x's 64 MiB physical VMEM


# ----------------------------------------------------------------------------
# Mask construction (faithful port of MADE.update_masks).
# ----------------------------------------------------------------------------
def build_made_masks(nin, hidden_sizes, nout, num_conditional, use_conditional,
                     seed=0):
    L = len(hidden_sizes)
    rng = np.random.RandomState(seed)
    m = {}
    m[-1] = np.arange(nin)
    m['last'] = np.arange(nin - num_conditional)
    for l in range(L):
        m[l] = rng.randint(m[l - 1].min(), nin - num_conditional - 1,
                           size=hidden_sizes[l])
    masks = [m[l - 1][:, None] <= m[l][None, :] for l in range(L)]
    # conditional inputs connect (or not) to every hidden unit of layer 0
    for i in range(1, num_conditional + 1):
        masks[0][masks[0].shape[0] - i, :] = use_conditional
    masks.append(m[L - 1][:, None] < m['last'][None, :])
    if nout >= nin:
        k = int(nout / (nin - num_conditional))
        masks[-1] = np.concatenate([masks[-1]] * k, axis=1)
    # masks[l] has shape (in_features_l, out_features_l)
    return [mk.astype(np.float32) for mk in masks]


# ----------------------------------------------------------------------------
# Kernel factory: three masked linear layers (ReLU between), processed in
# SUB-row chunks of the TB-row batch tile.
#   x_ref : (TB, nin_p) f32   (cast to bf16 in-kernel)
#   w*_ref: (in_p, out_p) bf16 (VMEM-resident across grid steps)
#   b*_ref: (1, out_p) f32
#   o_ref : (TB, nout_p) bf16
# ----------------------------------------------------------------------------
def _make_made_kernel(n_chunks, sub):
    def made_kernel(x_ref, w0_ref, b0_ref, w1_ref, b1_ref, w2_ref, b2_ref,
                    o_ref):
        b0 = b0_ref[...]
        b1 = b1_ref[...]
        b2 = b2_ref[...]

        def chunk(c, carry):
            r = pl.multiple_of(c * sub, sub)
            xc = x_ref[pl.ds(r, sub), :].astype(jnp.bfloat16)
            h0 = jnp.dot(xc, w0_ref[...],
                         preferred_element_type=jnp.float32) + b0
            h0 = jnp.maximum(h0, 0.0).astype(jnp.bfloat16)
            h1 = jnp.dot(h0, w1_ref[...],
                         preferred_element_type=jnp.float32) + b1
            h1 = jnp.maximum(h1, 0.0).astype(jnp.bfloat16)
            out = jnp.dot(h1, w2_ref[...],
                          preferred_element_type=jnp.float32) + b2
            o_ref[pl.ds(r, sub), :] = out.astype(o_ref.dtype)
            return carry

        lax.fori_loop(0, n_chunks, chunk, 0, unroll=True)

    return made_kernel


def _round_up(x, m):
    return (x + m - 1) // m * m


def _choose_tiles(B, nin_p, h0_p, h1_p, nout_p):
    """Pick (TB, SUB) and report the VMEM footprint estimate."""
    B16 = _round_up(max(B, 1), SUBLANE_BF16)
    if B16 <= SUBLANE_BF16:
        TB, SUB = B16, B16
    else:
        # >=2 grid steps so the "parallel" batch axis can shard across the two
        # TensorCores on v7x, while keeping zero-row padding waste small.
        n_steps = max(2, -(-B16 // MAX_BATCH_TILE))
        TB = _round_up(-(-B16 // n_steps), SUBLANE_BF16)
        if TB <= SUB_TILE:
            SUB = TB
        else:
            TB = _round_up(TB, SUB_TILE)
            SUB = SUB_TILE

    def vmem_bytes(tb, sub):
        w = 2 * 2 * (nin_p * h0_p + h0_p * h1_p + h1_p * nout_p)   # bf16, x2 buf
        bias = 2 * 4 * (h0_p + h1_p + nout_p)                      # f32,  x2 buf
        xb = 2 * tb * nin_p * 4                                    # f32 in, x2 buf
        ob = 2 * tb * nout_p * 2                                   # bf16 out, x2 buf
        scratch = sub * (h0_p + h1_p + 2 * nout_p) * 4             # live chunk acts
        return w + bias + xb + ob + scratch

    # Shrink the batch tile if the footprint would exceed the VMEM cap.
    # TODO(synk): for configs whose resident weights alone exceed the cap,
    # stream the largest weight (w1) via a K grid axis / emit_pipeline instead.
    while vmem_bytes(TB, SUB) > VMEM_CAP_BYTES and TB > SUBLANE_BF16:
        if TB > SUB:
            TB -= SUB
        else:
            TB = max(SUBLANE_BF16, _round_up(TB // 2, SUBLANE_BF16))
            SUB = TB

    return TB, SUB, vmem_bytes(TB, SUB)


def made_forward(x, params):
    """x: (B, nin) float32.  params: list of (W_in_out, b) already masked (f32)."""
    (w0, b0), (w1, b1), (w2, b2) = params
    B, nin = x.shape
    h0d, h1d, nout = w0.shape[1], w1.shape[1], w2.shape[1]

    # pad feature dims to lane multiples
    nin_p = _round_up(nin, LANE)
    h0_p = _round_up(h0d, LANE)
    h1_p = _round_up(h1d, LANE)
    nout_p = _round_up(nout, LANE)

    TB, SUB, vmem_need = _choose_tiles(B, nin_p, h0_p, h1_p, nout_p)
    B_p = _round_up(max(B, TB), TB)
    n_chunks = TB // SUB
    grid = (B_p // TB,)

    def pad2(a, rows, cols):
        if a.shape == (rows, cols):
            return a
        return jnp.pad(a, ((0, rows - a.shape[0]), (0, cols - a.shape[1])))

    # x stays f32 in HBM (no wrapper-side cast pass); kernel casts to bf16.
    x_in = pad2(x, B_p, nin_p)
    w0_p = pad2(w0, nin_p, h0_p).astype(jnp.bfloat16)
    w1_p = pad2(w1, h0_p, h1_p).astype(jnp.bfloat16)
    w2_p = pad2(w2, h1_p, nout_p).astype(jnp.bfloat16)
    b0_p = jnp.pad(b0, (0, h0_p - b0.shape[0])).reshape(1, -1).astype(jnp.float32)
    b1_p = jnp.pad(b1, (0, h1_p - b1.shape[0])).reshape(1, -1).astype(jnp.float32)
    b2_p = jnp.pad(b2, (0, nout_p - b2.shape[0])).reshape(1, -1).astype(jnp.float32)

    flops = 2 * B_p * (nin_p * h0_p + h0_p * h1_p + h1_p * nout_p)
    bytes_accessed = (
        x_in.size * 4 + w0_p.size * 2 + w1_p.size * 2 + w2_p.size * 2
        + (b0_p.size + b1_p.size + b2_p.size) * 4
        + B_p * nout_p * 2
    )
    cost = pl.CostEstimate(flops=flops, transcendentals=0,
                           bytes_accessed=bytes_accessed)

    # Explicit scoped-VMEM limit: v5e defaults to 16 MiB; keep under v7x's
    # 64 MiB physical per-TC VMEM.
    vmem_limit = int(min(max(2 * vmem_need, 32 << 20), 64 << 20))

    out = pl.pallas_call(
        _make_made_kernel(n_chunks, SUB),
        out_shape=jax.ShapeDtypeStruct((B_p, nout_p), jnp.bfloat16),
        grid=grid,
        in_specs=[
            pl.BlockSpec((TB, nin_p), lambda i: (i, 0)),      # streamed activations
            pl.BlockSpec((nin_p, h0_p), lambda i: (0, 0)),    # resident weights
            pl.BlockSpec((1, h0_p), lambda i: (0, 0)),
            pl.BlockSpec((h0_p, h1_p), lambda i: (0, 0)),
            pl.BlockSpec((1, h1_p), lambda i: (0, 0)),
            pl.BlockSpec((h1_p, nout_p), lambda i: (0, 0)),
            pl.BlockSpec((1, nout_p), lambda i: (0, 0)),
        ],
        out_specs=pl.BlockSpec((TB, nout_p), lambda i: (i, 0)),
        compiler_params=pltpu.CompilerParams(
            dimension_semantics=("parallel",),
            vmem_limit_bytes=vmem_limit),
        cost_estimate=cost,
    )(x_in, w0_p, b0_p, w1_p, b1_p, w2_p, b2_p)

    # slice away padding, upcast small result to f32 for downstream use
    return out[:B, :nout].astype(jnp.float32)


# ----------------------------------------------------------------------------
# Deterministic parameter init (nn.Linear-style uniform(-1/sqrt(fan_in), ..)),
# pre-multiplied by the MADE masks and stored in (in, out) layout.
# ----------------------------------------------------------------------------
def init_params(key, nin, hidden_sizes, nout, masks):
    hs = [nin] + list(hidden_sizes) + [nout]
    params = []
    for i, (h0, h1) in enumerate(zip(hs, hs[1:])):
        key, kw, kb = jax.random.split(key, 3)
        bound = 1.0 / np.sqrt(h0)
        # torch stores weight as (out, in); we build it as (in, out) directly
        w = jax.random.uniform(kw, (h0, h1), jnp.float32, -bound, bound)
        b = jax.random.uniform(kb, (h1,), jnp.float32, -bound, bound)
        w = w * jnp.asarray(masks[i])  # mask is (in, out)
        params.append((w, b))
    return params


def ref_forward(x, params):
    (w0, b0), (w1, b1), (w2, b2) = params
    h = jnp.maximum(x @ w0 + b0, 0.0)
    h = jnp.maximum(h @ w1 + b1, 0.0)
    return h @ w2 + b2


if __name__ == "__main__":
    # Small config consistent with MADE's asserts:
    #   nout % (nin - num_conditional) == 0
    nin = 8
    num_conditional = 2
    hidden_sizes = [32, 32]
    nout = 2 * (nin - num_conditional)   # mu and log_std -> 12
    use_conditional = True

    masks = build_made_masks(nin, hidden_sizes, nout, num_conditional,
                             use_conditional, seed=0)

    key = jax.random.PRNGKey(0)
    key, kx1, kx2 = jax.random.split(key, 3)
    params = init_params(key, nin, hidden_sizes, nout, masks)

    # (1) tiny batch, single grid step
    x_small = jax.random.normal(kx1, (2, nin), jnp.float32)
    out_small = jax.block_until_ready(made_forward(x_small, params))
    ref_small = ref_forward(x_small, params)
    assert out_small.shape == (2, nout)
    np.testing.assert_allclose(np.asarray(out_small), np.asarray(ref_small),
                               rtol=2e-2, atol=2e-2)

    # (2) larger batch exercising multiple pipelined grid steps (2 steps of
    #     192 rows -> no zero-row padding waste, and >=2 steps for megacore)
    x_big = jax.random.normal(kx2, (384, nin), jnp.float32)
    out_big = jax.block_until_ready(made_forward(x_big, params))
    ref_big = ref_forward(x_big, params)
    assert out_big.shape == (384, nout)
    np.testing.assert_allclose(np.asarray(out_big), np.asarray(ref_big),
                               rtol=2e-2, atol=2e-2)

    print("KERNEL_OK")
</pallas_src>

<mosaic_0001>
module attributes {stable_mosaic.version = 11 : i64} {
  func.func @made_kernel(%arg0: i32, %arg1: memref<16x128xf32, #tpu.memory_space<vmem>>, %arg2: memref<128x128xbf16, #tpu.memory_space<vmem>>, %arg3: memref<1x128xf32, #tpu.memory_space<vmem>>, %arg4: memref<128x128xbf16, #tpu.memory_space<vmem>>, %arg5: memref<1x128xf32, #tpu.memory_space<vmem>>, %arg6: memref<128x128xbf16, #tpu.memory_space<vmem>>, %arg7: memref<1x128xf32, #tpu.memory_space<vmem>>, %arg8: memref<16x128xbf16, #tpu.memory_space<vmem>>) attributes {dimension_semantics = [#tpu.dimension_semantics<parallel>], iteration_bounds = array<i64: 1>, scalar_prefetch = 0 : i64, scratch_operands = 0 : i64, tpu.core_type = #tpu.core_type<tc>, window_params = [{transform_indices = @transform_0, window_bounds = array<i64: 16, 128>}, {pipeline_mode = #tpu.pipeline_mode<synchronous>, transform_indices = @transform_1, window_bounds = array<i64: 128, 128>}, {pipeline_mode = #tpu.pipeline_mode<synchronous>, transform_indices = @transform_2, window_bounds = array<i64: 1, 128>}, {pipeline_mode = #tpu.pipeline_mode<synchronous>, transform_indices = @transform_3, window_bounds = array<i64: 128, 128>}, {pipeline_mode = #tpu.pipeline_mode<synchronous>, transform_indices = @transform_4, window_bounds = array<i64: 1, 128>}, {pipeline_mode = #tpu.pipeline_mode<synchronous>, transform_indices = @transform_5, window_bounds = array<i64: 128, 128>}, {pipeline_mode = #tpu.pipeline_mode<synchronous>, transform_indices = @transform_6, window_bounds = array<i64: 1, 128>}, {transform_indices = @transform_7, window_bounds = array<i64: 16, 128>}]} {
    %c0 = arith.constant 0 : index
    %c0_0 = arith.constant 0 : index
    %0 = vector.load %arg3[%c0, %c0_0] : memref<1x128xf32, #tpu.memory_space<vmem>>, vector<1x128xf32>
    %c0_1 = arith.constant 0 : index
    %c0_2 = arith.constant 0 : index
    %1 = vector.load %arg5[%c0_1, %c0_2] : memref<1x128xf32, #tpu.memory_space<vmem>>, vector<1x128xf32>
    %c0_3 = arith.constant 0 : index
    %c0_4 = arith.constant 0 : index
    %2 = vector.load %arg7[%c0_3, %c0_4] : memref<1x128xf32, #tpu.memory_space<vmem>>, vector<1x128xf32>
    %c0_i32 = arith.constant 0 : i32
    %c16_i32 = arith.constant 16 : i32
    %3 = arith.muli %c0_i32, %c16_i32 : i32
    %4 = tpu.assume_multiple %3, 16 : i32
    %5 = arith.index_cast %4 : i32 to index
    %c0_5 = arith.constant 0 : index
    %6 = vector.load %arg1[%5, %c0_5] : memref<16x128xf32, #tpu.memory_space<vmem>>, vector<16x128xf32>
    %7 = arith.truncf %6 : vector<16x128xf32> to vector<16x128xbf16>
    %c0_6 = arith.constant 0 : index
    %c0_7 = arith.constant 0 : index
    %8 = vector.load %arg2[%c0_6, %c0_7] : memref<128x128xbf16, #tpu.memory_space<vmem>>, vector<128x128xbf16>
    %cst = arith.constant dense<0.000000e+00> : vector<16x128xf32>
    %9 = tpu.matmul %7, %8, %cst {dimension_numbers = #tpu.dot_dimension_numbers<[1], [0], [0], [1], [0, 0, 1, 1], [], []>} : vector<16x128xbf16>, vector<128x128xbf16>, vector<16x128xf32> -> vector<16x128xf32>
    %10 = vector.broadcast %0 : vector<1x128xf32> to vector<16x128xf32>
    %11 = arith.addf %9, %10 : vector<16x128xf32>
    %cst_8 = arith.constant 0.000000e+00 : f32
    %12 = vector.broadcast %cst_8 : f32 to vector<16x128xf32>
    %13 = arith.maximumf %11, %12 : vector<16x128xf32>
    %14 = arith.truncf %13 : vector<16x128xf32> to vector<16x128xbf16>
    %c0_9 = arith.constant 0 : index
    %c0_10 = arith.constant 0 : index
    %15 = vector.load %arg4[%c0_9, %c0_10] : memref<128x128xbf16, #tpu.memory_space<vmem>>, vector<128x128xbf16>
    %cst_11 = arith.constant dense<0.000000e+00> : vector<16x128xf32>
    %16 = tpu.matmul %14, %15, %cst_11 {dimension_numbers = #tpu.dot_dimension_numbers<[1], [0], [0], [1], [0, 0, 1, 1], [], []>} : vector<16x128xbf16>, vector<128x128xbf16>, vector<16x128xf32> -> vector<16x128xf32>
    %17 = vector.broadcast %1 : vector<1x128xf32> to vector<16x128xf32>
    %18 = arith.addf %16, %17 : vector<16x128xf32>
    %cst_12 = arith.constant 0.000000e+00 : f32
    %19 = vector.broadcast %cst_12 : f32 to vector<16x128xf32>
    %20 = arith.maximumf %18, %19 : vector<16x128xf32>
    %21 = arith.truncf %20 : vector<16x128xf32> to vector<16x128xbf16>
    %c0_13 = arith.constant 0 : index
    %c0_14 = arith.constant 0 : index
    %22 = vector.load %arg6[%c0_13, %c0_14] : memref<128x128xbf16, #tpu.memory_space<vmem>>, vector<128x128xbf16>
    %cst_15 = arith.constant dense<0.000000e+00> : vector<16x128xf32>
    %23 = tpu.matmul %21, %22, %cst_15 {dimension_numbers = #tpu.dot_dimension_numbers<[1], [0], [0], [1], [0, 0, 1, 1], [], []>} : vector<16x128xbf16>, vector<128x128xbf16>, vector<16x128xf32> -> vector<16x128xf32>
    %24 = vector.broadcast %2 : vector<1x128xf32> to vector<16x128xf32>
    %25 = arith.addf %23, %24 : vector<16x128xf32>
    %26 = arith.truncf %25 : vector<16x128xf32> to vector<16x128xbf16>
    %27 = arith.index_cast %4 : i32 to index
    %c0_16 = arith.constant 0 : index
    %28 = vector.load %arg8[%27, %c0_16] : memref<16x128xbf16, #tpu.memory_space<vmem>>, vector<16x128xbf16>
    tpu.vector_store %arg8[%27, %c0_16], %26 {strides = array<i32>} : memref<16x128xbf16, #tpu.memory_space<vmem>>, vector<16x128xbf16>,
    %c1_i32 = arith.constant 1 : i32
    return
  }
  func.func @transform_0(%arg0: i32) -> (i32, i32) {
    %c0_i32 = arith.constant 0 : i32
    %c0_i32_0 = arith.constant 0 : i32
    return %arg0, %c0_i32 : i32, i32
  }
  func.func @transform_1(%arg0: i32) -> (i32, i32) {
    %c0_i32 = arith.constant 0 : i32
    %c0_i32_0 = arith.constant 0 : i32
    %c0_i32_1 = arith.constant 0 : i32
    return %c0_i32, %c0_i32_0 : i32, i32
  }
  func.func @transform_2(%arg0: i32) -> (i32, i32) {
    %c0_i32 = arith.constant 0 : i32
    %c0_i32_0 = arith.constant 0 : i32
    %c0_i32_1 = arith.constant 0 : i32
    return %c0_i32, %c0_i32_0 : i32, i32
  }
  func.func @transform_3(%arg0: i32) -> (i32, i32) {
    %c0_i32 = arith.constant 0 : i32
    %c0_i32_0 = arith.constant 0 : i32
    %c0_i32_1 = arith.constant 0 : i32
    return %c0_i32, %c0_i32_0 : i32, i32
  }
  func.func @transform_4(%arg0: i32) -> (i32, i32) {
    %c0_i32 = arith.constant 0 : i32
    %c0_i32_0 = arith.constant 0 : i32
    %c0_i32_1 = arith.constant 0 : i32
    return %c0_i32, %c0_i32_0 : i32, i32
  }
  func.func @transform_5(%arg0: i32) -> (i32, i32) {
    %c0_i32 = arith.constant 0 : i32
    %c0_i32_0 = arith.constant 0 : i32
    %c0_i32_1 = arith.constant 0 : i32
    return %c0_i32, %c0_i32_0 : i32, i32
  }
  func.func @transform_6(%arg0: i32) -> (i32, i32) {
    %c0_i32 = arith.constant 0 : i32
    %c0_i32_0 = arith.constant 0 : i32
    %c0_i32_1 = arith.constant 0 : i32
    return %c0_i32, %c0_i32_0 : i32, i32
  }
  func.func @transform_7(%arg0: i32) -> (i32, i32) {
    %c0_i32 = arith.constant 0 : i32
    %c0_i32_0 = arith.constant 0 : i32
    return %arg0, %c0_i32 : i32, i32
  }
}

</mosaic_0001>

<bundles_post_ra>
// kernel: tpu_custom_call.1
= control target key start
LH: loop header
LB: loop body
LE: loop exit
PB: predicated region body
PF: predicated region fallthrough
CT: control target
= control target key end

     0   :  { %12 = vsyncpa [#allocation3], 0  ;;  %s720_s0 = inlined_call_operand.hbm [shape: f32[16,128], index: 0, kind: input, shape index: {}]   ;;  %s721_s1 = inlined_call_operand.hbm [shape: bf16[128,128], index: 1, kind: input, shape index: {}]   ;;  %s722_s2 = inlined_call_operand.vmem [shape: f32[1,128], index: 2, kind: input, shape index: {}]   ;;  %s723_s3 = inlined_call_operand.hbm [shape: bf16[128,128], index: 3, kind: input, shape index: {}]   ;;  %s724_s4 = inlined_call_operand.vmem [shape: f32[1,128], index: 4, kind: input, shape index: {}]   ;;  %s725_s5 = inlined_call_operand.hbm [shape: bf16[128,128], index: 5, kind: input, shape index: {}]   ;;  %s726_s6 = inlined_call_operand.vmem [shape: f32[1,128], index: 6, kind: input, shape index: {}]   ;;  %s727_s7 = inlined_call_operand.hbm [shape: bf16[16,128], index: 7, kind: output, shape index: {}]  }
   0x1   :  { %13 = vsyncpa [#allocation6], 0 }
   0x2   :  { %14 = vsyncpa [#allocation9], 0  ;;  %s33_s26 = sshll.u32 %s721_s1, 4  ;;  %s34_s26 = int_to_ptr.hbm [resolvable:$true] %s33_s26 }
   0x3   :  { %15 = vsyncpa [#allocation4], 0  ;;  %s635_s27 = smov [#allocation5]   ;;  %s20_s8 = sshll.u32 %s720_s0, 4  ;;  %s21_s8 = int_to_ptr.hbm [resolvable:$true] %s20_s8 }
   0x4   :  { %s35_s28 = sshll.u32 %s635_s27, 4  ;;  %s636_s9 = smov 64   ;;  %s36_s28 = int_to_ptr.vmem [resolvable:$true] %s35_s28 }
   0x5   :  { %s637_s10 = smov 4   ;;  %s638_s11 = smov [#allocation2]  }
   0x6   :  { %41 = dma.hbm_to_vmem [thread:$0]  %s34_s26, 1024, %s36_s28, [#allocation6], %s636_s9, %s636_s9, %s637_s10  }
   0x7   :  { %s22_s12 = sshll.u32 %s638_s11, 4  ;;  %s639_s1 = smov 128   ;;  %s23_s12 = int_to_ptr.vmem [resolvable:$true] %s22_s12 }
   0x8   :  { %s640_s13 = smov 8   ;;  %s48_s16 = sshll.u32 %s723_s3, 4  ;;  %s49_s16 = int_to_ptr.hbm [resolvable:$true] %s48_s16 }
   0x9   :  { %28 = dma.hbm_to_vmem [thread:$0]  %s21_s8, 256, %s23_s12, [#allocation3], %s639_s1, %s639_s1, %s640_s13  }
   0xa   :  { %s641_s17 = smov [#allocation7]   ;;  %s63_s20 = sshll.u32 %s725_s5, 4  ;;  %s64_s20 = int_to_ptr.hbm [resolvable:$true] %s63_s20 }
   0xb   :  { %s50_s0 = sshll.u32 %s641_s17, 4  ;;  %s642_s21 = smov [#allocation8]   ;;  %s51_s0 = int_to_ptr.vmem [resolvable:$true] %s50_s0 }
   0xc   :  { %56 = dma.hbm_to_vmem [thread:$0]  %s49_s16, 1024, %s51_s0, [#allocation6], %s636_s9, %s636_s9, %s637_s10  }
   0xd   :  { %s65_s22 = sshll.u32 %s642_s21, 4  ;;  %s66_s22 = int_to_ptr.vmem [resolvable:$true] %s65_s22 }
   0xe   :  { %71 = dma.hbm_to_vmem [thread:$0]  %s64_s20, 1024, %s66_s22, [#allocation9], %s636_s9, %s636_s9, %s637_s10  }
   0xf   :  { %627 = dma.done.wait [#allocation3], 256  }
  0x10   :  { %628 = vsyncadd [#allocation3], 4294967040 }
  0x11   :  { %629 = dma.done.wait [#allocation6], 2048  }
  0x12   :  { %630 = vsyncadd [#allocation6], 4294965248 }
  0x13   :  { %631 = dma.done.wait [#allocation9], 1024  }
  0x14   :  { %632 = vsyncadd [#allocation9], 4294966272  ;;  %v473_v0 = vld [vmem:[#allocation5 + $0x38] sm:$0xff]  ;;  %v472_v1 = vld [vmem:[#allocation5 + $0x30] sm:$0xff]  ;;  %s643_s26 = smov [#allocation10]   ;;  %s355_s30 = sshll.u32 %s727_s7, 4  ;;  %s356_s30 = int_to_ptr.hbm [resolvable:$true] %s355_s30 }
  0x15   :  { %163 = vmatpush.bf16.msra.mxu0 %v473_v0  ;;  %v481_v2 = vld [vmem:[#allocation7 + $0x38] sm:$0xff]  ;;  %v480_v3 = vld [vmem:[#allocation7 + $0x30] sm:$0xff]  ;;  %v471_v4 = vld [vmem:[#allocation5 + $0x28] sm:$0xff]  ;;  %s353_s27 = sshll.u32 %s643_s26, 4  ;;  %s354_s27 = int_to_ptr.vmem [resolvable:$true] %s353_s27 }
  0x16   :  { %247 = vmatpush.bf16.msra.mxu1 %v481_v2  ;;  %v479_v5 = vld [vmem:[#allocation7 + $0x28] sm:$0xff]  ;;  %v470_v6 = vld [vmem:[#allocation5 + $0x20] sm:$0xff]  ;;  %v469_v8 = vld [vmem:[#allocation5 + $0x18] sm:$0xff] }
  0x17   :  { %v478_v7 = vld [vmem:[#allocation7 + $0x20] sm:$0xff]  ;;  %v468_v9 = vld [vmem:[#allocation5 + $0x10] sm:$0xff]  ;;  %v467_v10 = vld [vmem:[#allocation5 + $0x8] sm:$0xff] }
  0x18   :  { %v466_v11 = vld [vmem:[#allocation5] sm:$0xff]  ;;  %v93_v12 = vld [vmem:[#allocation2] sm:$0xff]  ;;  %v94_v13 = vld [vmem:[#allocation2 + $0x8] sm:$0xff] }
  0x19   :  { %164 = vmatpush.bf16.msra.mxu0 %v472_v1  ;;  %v95_v14 = vpack.c.bf16 %v94_v13, %v93_v12  ;;  %v477_v15 = vld [vmem:[#allocation7 + $0x18] sm:$0xff]  ;;  %v476_v16 = vld [vmem:[#allocation7 + $0x10] sm:$0xff]  ;;  %v475_v17 = vld [vmem:[#allocation7 + $0x8] sm:$0xff] }
  0x1a   :  { %248 = vmatpush.bf16.msra.mxu1 %v480_v3  ;;  %v474_v18 = vld [vmem:[#allocation7] sm:$0xff]  ;;  %v489_v19 = vld [vmem:[#allocation8 + $0x38] sm:$0xff]  ;;  %v488_v20 = vld [vmem:[#allocation8 + $0x30] sm:$0xff] }
  0x1b   :  { %331 = vmatpush.bf16.msra.mxu2 %v489_v19  ;;  %v487_v21 = vld [vmem:[#allocation8 + $0x28] sm:$0xff]  ;;  %v486_v22 = vld [vmem:[#allocation8 + $0x20] sm:$0xff]  ;;  %v504_v24 = vld [vmem:[%s722_s2] ss:$0 sm:$0xff] }
  0x1c   :  { %v485_v31 = vld [vmem:[#allocation8 + $0x18] sm:$0xff]  ;;  %v484_v32 = vld [vmem:[#allocation8 + $0x10] sm:$0xff]  ;;  %v483_v33 = vld [vmem:[#allocation8 + $0x8] sm:$0xff] }
  0x1d   :  { %165 = vmatpush.bf16.msra.mxu0 %v471_v4  ;;  %v482_v34 = vld [vmem:[#allocation8] sm:$0xff]  ;;  %v505_v36 = vld [vmem:[%s724_s4] ss:$0 sm:$0xff] }
  0x1e   :  { %249 = vmatpush.bf16.msra.mxu1 %v479_v5  ;;  %v506_v44 = vld [vmem:[%s726_s6] ss:$0 sm:$0xff] }
  0x1f   :  { %332 = vmatpush.bf16.msra.mxu2 %v488_v20 }
  0x21   :  { %166 = vmatpush.bf16.msra.mxu0 %v470_v6 }
  0x22   :  { %250 = vmatpush.bf16.msra.mxu1 %v478_v7 }
  0x23   :  { %333 = vmatpush.bf16.msra.mxu2 %v487_v21 }
  0x25   :  { %167 = vmatpush.bf16.msra.mxu0 %v469_v8 }
  0x26   :  { %251 = vmatpush.bf16.msra.mxu1 %v477_v15 }
  0x27   :  { %334 = vmatpush.bf16.msra.mxu2 %v486_v22 }
  0x29   :  { %168 = vmatpush.bf16.msra.mxu0 %v468_v9 }
  0x2a   :  { %252 = vmatpush.bf16.msra.mxu1 %v476_v16 }
  0x2b   :  { %335 = vmatpush.bf16.msra.mxu2 %v485_v31 }
  0x2d   :  { %169 = vmatpush.bf16.msra.mxu0 %v467_v10 }
  0x2e   :  { %253 = vmatpush.bf16.msra.mxu1 %v475_v17 }
  0x2f   :  { %336 = vmatpush.bf16.msra.mxu2 %v484_v32 }
  0x31   :  { %170 = vmatpush.bf16.msra.mxu0 %v466_v11 }
  0x32   :  { %254 = vmatpush.bf16.msra.mxu1 %v474_v18 }
  0x33   :  { %337 = vmatpush.bf16.msra.mxu2 %v483_v33 }
  0x34   :  { %171 = vmatmul.bf16.vlgmr.msra.gmra.mxu0 %v95_v14 }
  0x37   :  { %338 = vmatpush.bf16.msra.mxu2 %v482_v34 }
  0xb1   :  { %v172_v23 = vpop.f32.mrf.mxu0 }
  0xb2   :  { %v173_v25 = vadd.f32 %v504_v24, %v172_v23 }
  0xb4   :  { %v177_v28 = vmax.f32 %v173_v25, 0.0 }
  0xb9   :  { %v174_v26 = vpop.f32.mrf.mxu0 }
  0xba   :  { %v175_v27 = vadd.f32 %v504_v24, %v174_v26 }
  0xbc   :  { %v178_v29 = vmax.f32 %v175_v27, 0.0 }
  0xbe   :  { %v179_v30 = vpack.c.bf16 %v178_v29, %v177_v28 }
  0xc0   :  { %255 = vmatmul.bf16.vlgmr.msra.gmra.mxu1 %v179_v30 }
 0x13d   :  { %v256_v35 = vpop.f32.mrf.mxu1 }
 0x13e   :  { %v257_v37 = vadd.f32 %v505_v36, %v256_v35 }
 0x140   :  { %v261_v40 = vmax.f32 %v257_v37, 0.0 }
 0x145   :  { %v258_v38 = vpop.f32.mrf.mxu1 }
 0x146   :  { %v259_v39 = vadd.f32 %v505_v36, %v258_v38 }
 0x148   :  { %v262_v41 = vmax.f32 %v259_v39, 0.0 }
 0x14a   :  { %v263_v42 = vpack.c.bf16 %v262_v41, %v261_v40 }
 0x14c   :  { %339 = vmatmul.bf16.vlgmr.msra.gmra.mxu2 %v263_v42 }
 0x1cf   :  { %v340_v43 = vpop.f32.mrf.mxu2 }
 0x1d0   :  { %v341_v46 = vadd.f32 %v506_v44, %v340_v43 }
 0x1d7   :  { %v342_v45 = vpop.f32.mrf.mxu2 }
 0x1d8   :  { %v343_v47 = vadd.f32 %v506_v44, %v342_v45 }
 0x1da   :  { %v493_v48 = vpack.c.bf16 %v343_v47, %v341_v46 }
 0x1dc   :  { %494 = vst [vmem:[#allocation10] sm:$0xff] %v493_v48  }
 0x1dd   :  { %361 = dma.vmem_to_hbm [thread:$0]  %s354_s27, 128, %s356_s30, [#allocation4], %s636_s9, %s636_s9, %s637_s10  }
 0x1de   :  { %633 = dma.done.wait [#allocation4], 128  }
 0x1df   :  { %634 = vsyncadd [#allocation4], 4294967168 }
 0x1e0   :  { %366 = vsyncpa [#allocation3], 1 }
 0x1e1   :  { %367 = vsyncpa [#allocation6], 1 }
 0x1e2   :  { %368 = vsyncpa [#allocation9], 1 }
 0x1e3   :  { %369 = vsyncpa [#allocation4], 1 }

</bundles_post_ra>
